<compile_context>
chip_gen: v6e
topology: v6e:2x2x1
jax: 0.10.0
libtpu: 0.0.40
codegen_flags: <defaults>
</compile_context>

<pallas_src>
import jax
import jax.numpy as jnp
from jax.experimental import pallas as pl
from jax.experimental.pallas import tpu as pltpu


def _head_kernel(x_ref, scale_ref, shift_ref, a_ref, lw_ref, lb_ref, out_ref):
    """One grid step = TB batch rows.

    Block shapes:
      x_ref:     (TB, C_in*HW)        input rows (channel-major, flat HW)
      scale_ref: (1,  C_in*HW)        folded BN scale, repeated HW/channel
      shift_ref: (1,  C_in*HW)        folded BN shift, repeated HW/channel
      a_ref:     (C_in*HW, C_out) bf16  conv3x3(pad=1)+avgpool folded (incl. 1/HW)
      lw_ref:    (C_out, NCp)     bf16  linear weight^T, lane-padded to NCp
      lb_ref:    (1, NCp)               linear bias, lane-padded
      out_ref:   (TB, NCp)              logits, lane-padded
    """
    # --- BatchNorm2d (eval, folded affine) + Swish, f32 on the VPU ----------
    x = x_ref[...].astype(jnp.float32)
    y = x * scale_ref[...] + shift_ref[...]
    # Numerically stable sigmoid: exp(-|y|) never overflows; exp + reciprocal
    # both land on the EUP slot, select/mul on the VPU.
    e = jnp.exp(-jnp.abs(y))
    inv = pl.reciprocal(1.0 + e, approx=True)
    sig = jnp.where(y >= 0.0, inv, e * inv)
    y = y * sig                                           # Swish

    # --- Conv3x3(pad=1) + global avg pool == one bf16 MXU matmul ------------
    pooled = jnp.dot(y.astype(jnp.bfloat16), a_ref[...],
                     preferred_element_type=jnp.float32)  # (TB, C_out)

    # --- Linear --------------------------------------------------------------
    logits = jnp.dot(pooled.astype(jnp.bfloat16), lw_ref[...],
                     preferred_element_type=jnp.float32) + lb_ref[...]
    out_ref[...] = logits.astype(out_ref.dtype)


def _conv_pool_masks(h, w):
    """mask[p, 3*di+dj] = 1 iff input position p contributes to tap (di, dj)
    of a 3x3 / padding=1 conv when the conv output is summed over all pixels."""
    def axis_masks(n):
        full = jnp.ones((n,), jnp.float32)
        no_last = full.at[n - 1].set(0.0)     # d = 0 : rows/cols 0 .. n-2
        no_first = full.at[0].set(0.0)        # d = 2 : rows/cols 1 .. n-1
        return jnp.stack([no_last, full, no_first])            # (3, n)

    rm = axis_masks(h)                                          # (3, H)
    cm = axis_masks(w)                                          # (3, W)
    m = jnp.einsum("ai,bj->ijab", rm, cm)                       # (H, W, 3, 3)
    return m.reshape(h * w, 9)                                  # (HW, 9), f32


def _round_up(n, m):
    return ((n + m - 1) // m) * m


@jax.jit
def classification_head(x, bn_gamma, bn_beta, bn_mean, bn_var,
                        conv_w, lin_w, lin_b, eps=1e-5):
    """Forward pass of ClassificationHead (inference semantics)."""
    B, C_in, H, W = x.shape
    C_out = conv_w.shape[0]
    NC = lin_w.shape[0]
    HW = H * W
    K = C_in * HW
    NCp = _round_up(NC, 128)                 # lane-dense output

    # ---- batch tiling --------------------------------------------------------
    b_pad = _round_up(B, 8)                  # f32 sublane alignment
    tb = min(128, b_pad)
    if b_pad >= 16 and b_pad // tb < 2:
        tb = _round_up(b_pad // 2, 8)        # >=2 grid steps for v7x's 2 TCs
    b_pad = _round_up(b_pad, tb)
    grid = b_pad // tb

    # ---- parameter folding (host-side, tiny, one-time) ----------------------
    # TODO(synk): training-mode BatchNorm (batch statistics) is not implemented;
    # eval-mode running statistics are folded into a per-channel affine.
    scale = bn_gamma.astype(jnp.float32) * jax.lax.rsqrt(
        bn_var.astype(jnp.float32) + eps)
    shift = bn_beta.astype(jnp.float32) - bn_mean.astype(jnp.float32) * scale
    scale_row = jnp.repeat(scale, HW).reshape(1, K)
    shift_row = jnp.repeat(shift, HW).reshape(1, K)

    # Fold conv3x3(pad=1) + mean pool (+ 1/HW) into A : (C_in*HW, C_out), bf16.
    masks = _conv_pool_masks(H, W)                               # (HW, 9)
    w9 = conv_w.reshape(C_out, C_in, 9).astype(jnp.float32)      # taps di*3+dj
    A = jnp.einsum("pt,oct->cpo", masks, w9) * (1.0 / HW)        # (C_in, HW, C_out)
    A = A.reshape(K, C_out).astype(jnp.bfloat16)

    lw = jnp.zeros((C_out, NCp), jnp.float32)
    lw = lw.at[:, :NC].set(lin_w.T.astype(jnp.float32)).astype(jnp.bfloat16)
    lb = jnp.zeros((1, NCp), jnp.float32).at[0, :NC].set(lin_b.astype(jnp.float32))

    # ---- data path: contiguous reshape (+ zero-pad rows only if B % 8 != 0) --
    x2 = x.reshape(B, K)
    if b_pad != B:
        x2 = jnp.pad(x2, ((0, b_pad - B), (0, 0)))

    # VMEM budget: double-buffered pipeline blocks + headroom for temporaries.
    # NOTE: constant-index weight blocks are also double-buffered by the default
    # pipeline; their 2x footprint is counted here (pl.Buffered(1) could halve
    # it on v7x; left at the default for portability).
    blk_bytes = (2 * tb * K * x2.dtype.itemsize      # x rows
                 + 2 * 2 * K * 4                     # BN scale + shift rows
                 + 2 * K * C_out * 2                 # A (bf16)
                 + 2 * C_out * NCp * 2               # lw (bf16)
                 + 2 * NCp * 4                       # lb
                 + 2 * tb * NCp * x.dtype.itemsize)  # output
    vmem_limit = int(min(96 * 2**20, max(16 * 2**20, blk_bytes + 8 * tb * K * 4)))

    out = pl.pallas_call(
        _head_kernel,
        out_shape=jax.ShapeDtypeStruct((b_pad, NCp), x.dtype),
        grid_spec=pltpu.PrefetchScalarGridSpec(
            num_scalar_prefetch=0,
            grid=(grid,),
            in_specs=[
                pl.BlockSpec((tb, K), lambda b: (b, 0)),        # x rows
                pl.BlockSpec((1, K), lambda b: (0, 0)),         # BN scale row
                pl.BlockSpec((1, K), lambda b: (0, 0)),         # BN shift row
                pl.BlockSpec((K, C_out), lambda b: (0, 0)),     # folded conv+pool
                pl.BlockSpec((C_out, NCp), lambda b: (0, 0)),   # linear W^T
                pl.BlockSpec((1, NCp), lambda b: (0, 0)),       # linear bias
            ],
            out_specs=pl.BlockSpec((tb, NCp), lambda b: (b, 0)),
        ),
        compiler_params=pltpu.CompilerParams(
            dimension_semantics=("parallel",),
            vmem_limit_bytes=vmem_limit),
    )(x2, scale_row, shift_row, A, lw, lb)

    return out[:B, :NC]


def classification_head_ref(x, bn_gamma, bn_beta, bn_mean, bn_var,
                            conv_w, lin_w, lin_b, eps=1e-5):
    """Plain-JAX reference mirroring the PyTorch module (eval mode)."""
    inv = jax.lax.rsqrt(bn_var + eps)
    y = ((x - bn_mean[None, :, None, None])
         * (bn_gamma * inv)[None, :, None, None]
         + bn_beta[None, :, None, None])
    y = y * jax.nn.sigmoid(y)                                    # Swish
    out = jax.lax.conv_general_dilated(
        y, conv_w, window_strides=(1, 1), padding=((1, 1), (1, 1)),
        dimension_numbers=("NCHW", "OIHW", "NCHW"))
    pooled = jnp.mean(out, axis=(2, 3))                          # (B, C_out)
    return pooled @ lin_w.T + lin_b


if __name__ == "__main__":
    key = jax.random.PRNGKey(0)
    ks = jax.random.split(key, 8)

    B, C_in, H, W = 2, 4, 16, 16
    expansion, n_classes = 4, 10
    C_out = 32 * expansion

    x = jax.random.normal(ks[0], (B, C_in, H, W), dtype=jnp.float32)
    bn_gamma = 1.0 + 0.1 * jax.random.normal(ks[1], (C_in,), dtype=jnp.float32)
    bn_beta = 0.1 * jax.random.normal(ks[2], (C_in,), dtype=jnp.float32)
    bn_mean = 0.1 * jax.random.normal(ks[3], (C_in,), dtype=jnp.float32)
    bn_var = jax.random.uniform(ks[4], (C_in,), dtype=jnp.float32,
                                minval=0.5, maxval=1.5)
    conv_w = jax.random.normal(ks[5], (C_out, C_in, 3, 3), dtype=jnp.float32)
    conv_w = conv_w * (1.0 / (C_in * 9) ** 0.5)
    lin_w = jax.random.normal(ks[6], (n_classes, C_out), dtype=jnp.float32)
    lin_w = lin_w * (1.0 / C_out ** 0.5)
    lin_b = 0.1 * jax.random.normal(ks[7], (n_classes,), dtype=jnp.float32)

    out = classification_head(x, bn_gamma, bn_beta, bn_mean, bn_var,
                              conv_w, lin_w, lin_b)
    out = jax.block_until_ready(out)

    ref = classification_head_ref(x, bn_gamma, bn_beta, bn_mean, bn_var,
                                  conv_w, lin_w, lin_b)
    assert out.shape == (B, n_classes), out.shape
    assert out.dtype == x.dtype, out.dtype
    err = float(jnp.max(jnp.abs(out - ref)))
    # bf16 MXU operands + approx EUP reciprocal -> looser tolerance than f32.
    assert err < 2e-2, f"max abs error vs reference: {err}"
    print("KERNEL_OK")
</pallas_src>

<mosaic_0001>
module attributes {stable_mosaic.version = 11 : i64} {
  func.func @_head_kernel(%arg0: i32, %arg1: memref<8x1024xf32, #tpu.memory_space<vmem>>, %arg2: memref<1x1024xf32, #tpu.memory_space<vmem>>, %arg3: memref<1x1024xf32, #tpu.memory_space<vmem>>, %arg4: memref<1024x128xbf16, #tpu.memory_space<vmem>>, %arg5: memref<128x128xbf16, #tpu.memory_space<vmem>>, %arg6: memref<1x128xf32, #tpu.memory_space<vmem>>, %arg7: memref<8x128xf32, #tpu.memory_space<vmem>>) attributes {dimension_semantics = [#tpu.dimension_semantics<parallel>], iteration_bounds = array<i64: 1>, scalar_prefetch = 0 : i64, scratch_operands = 0 : i64, tpu.core_type = #tpu.core_type<tc>, window_params = [{transform_indices = @transform_0, window_bounds = array<i64: 8, 1024>}, {pipeline_mode = #tpu.pipeline_mode<synchronous>, transform_indices = @transform_1, window_bounds = array<i64: 1, 1024>}, {pipeline_mode = #tpu.pipeline_mode<synchronous>, transform_indices = @transform_2, window_bounds = array<i64: 1, 1024>}, {pipeline_mode = #tpu.pipeline_mode<synchronous>, transform_indices = @transform_3, window_bounds = array<i64: 1024, 128>}, {pipeline_mode = #tpu.pipeline_mode<synchronous>, transform_indices = @transform_4, window_bounds = array<i64: 128, 128>}, {pipeline_mode = #tpu.pipeline_mode<synchronous>, transform_indices = @transform_5, window_bounds = array<i64: 1, 128>}, {transform_indices = @transform_6, window_bounds = array<i64: 8, 128>}]} {
    %c0 = arith.constant 0 : index
    %c0_0 = arith.constant 0 : index
    %0 = vector.load %arg1[%c0, %c0_0] : memref<8x1024xf32, #tpu.memory_space<vmem>>, vector<8x1024xf32>
    %c0_1 = arith.constant 0 : index
    %c0_2 = arith.constant 0 : index
    %1 = vector.load %arg2[%c0_1, %c0_2] : memref<1x1024xf32, #tpu.memory_space<vmem>>, vector<1x1024xf32>
    %2 = vector.broadcast %1 : vector<1x1024xf32> to vector<8x1024xf32>
    %3 = arith.mulf %0, %2 : vector<8x1024xf32>
    %c0_3 = arith.constant 0 : index
    %c0_4 = arith.constant 0 : index
    %4 = vector.load %arg3[%c0_3, %c0_4] : memref<1x1024xf32, #tpu.memory_space<vmem>>, vector<1x1024xf32>
    %5 = vector.broadcast %4 : vector<1x1024xf32> to vector<8x1024xf32>
    %6 = arith.addf %3, %5 : vector<8x1024xf32>
    %7 = math.absf %6 : vector<8x1024xf32>
    %cst = arith.constant 0.000000e+00 : f32
    %8 = vector.broadcast %cst : f32 to vector<8x1024xf32>
    %9 = arith.subf %8, %7 : vector<8x1024xf32>
    %10 = math.exp %9 : vector<8x1024xf32>
    %cst_5 = arith.constant 1.000000e+00 : f32
    %11 = vector.broadcast %cst_5 : f32 to vector<8x1024xf32>
    %12 = arith.addf %11, %10 : vector<8x1024xf32>
    %13 = tpu.reciprocal %12 {approx = true} : vector<8x1024xf32> -> vector<8x1024xf32>
    %cst_6 = arith.constant 0.000000e+00 : f32
    %14 = vector.broadcast %cst_6 : f32 to vector<8x1024xf32>
    %15 = arith.cmpf oge, %6, %14 : vector<8x1024xf32>
    %16 = arith.mulf %10, %13 : vector<8x1024xf32>
    %17 = arith.select %15, %13, %16 : vector<8x1024xi1>, vector<8x1024xf32>
    %18 = arith.mulf %6, %17 : vector<8x1024xf32>
    %19 = arith.truncf %18 : vector<8x1024xf32> to vector<8x1024xbf16>
    %c0_7 = arith.constant 0 : index
    %c0_8 = arith.constant 0 : index
    %20 = vector.load %arg4[%c0_7, %c0_8] : memref<1024x128xbf16, #tpu.memory_space<vmem>>, vector<1024x128xbf16>
    %cst_9 = arith.constant dense<0.000000e+00> : vector<8x128xf32>
    %21 = tpu.matmul %19, %20, %cst_9 {dimension_numbers = #tpu.dot_dimension_numbers<[1], [0], [0], [1], [0, 0, 1, 1], [], []>} : vector<8x1024xbf16>, vector<1024x128xbf16>, vector<8x128xf32> -> vector<8x128xf32>
    %22 = arith.truncf %21 : vector<8x128xf32> to vector<8x128xbf16>
    %c0_10 = arith.constant 0 : index
    %c0_11 = arith.constant 0 : index
    %23 = vector.load %arg5[%c0_10, %c0_11] : memref<128x128xbf16, #tpu.memory_space<vmem>>, vector<128x128xbf16>
    %cst_12 = arith.constant dense<0.000000e+00> : vector<8x128xf32>
    %24 = tpu.matmul %22, %23, %cst_12 {dimension_numbers = #tpu.dot_dimension_numbers<[1], [0], [0], [1], [0, 0, 1, 1], [], []>} : vector<8x128xbf16>, vector<128x128xbf16>, vector<8x128xf32> -> vector<8x128xf32>
    %c0_13 = arith.constant 0 : index
    %c0_14 = arith.constant 0 : index
    %25 = vector.load %arg6[%c0_13, %c0_14] : memref<1x128xf32, #tpu.memory_space<vmem>>, vector<1x128xf32>
    %26 = vector.broadcast %25 : vector<1x128xf32> to vector<8x128xf32>
    %27 = arith.addf %24, %26 : vector<8x128xf32>
    %c0_15 = arith.constant 0 : index
    %c0_16 = arith.constant 0 : index
    %28 = vector.load %arg7[%c0_15, %c0_16] : memref<8x128xf32, #tpu.memory_space<vmem>>, vector<8x128xf32>
    tpu.vector_store %arg7[%c0_15, %c0_16], %27 {strides = array<i32>} : memref<8x128xf32, #tpu.memory_space<vmem>>, vector<8x128xf32>,
    return
  }
  func.func @transform_0(%arg0: i32) -> (i32, i32) {
    %c0_i32 = arith.constant 0 : i32
    %c0_i32_0 = arith.constant 0 : i32
    return %arg0, %c0_i32 : i32, i32
  }
  func.func @transform_1(%arg0: i32) -> (i32, i32) {
    %c0_i32 = arith.constant 0 : i32
    %c0_i32_0 = arith.constant 0 : i32
    %c0_i32_1 = arith.constant 0 : i32
    return %c0_i32, %c0_i32_0 : i32, i32
  }
  func.func @transform_2(%arg0: i32) -> (i32, i32) {
    %c0_i32 = arith.constant 0 : i32
    %c0_i32_0 = arith.constant 0 : i32
    %c0_i32_1 = arith.constant 0 : i32
    return %c0_i32, %c0_i32_0 : i32, i32
  }
  func.func @transform_3(%arg0: i32) -> (i32, i32) {
    %c0_i32 = arith.constant 0 : i32
    %c0_i32_0 = arith.constant 0 : i32
    %c0_i32_1 = arith.constant 0 : i32
    return %c0_i32, %c0_i32_0 : i32, i32
  }
  func.func @transform_4(%arg0: i32) -> (i32, i32) {
    %c0_i32 = arith.constant 0 : i32
    %c0_i32_0 = arith.constant 0 : i32
    %c0_i32_1 = arith.constant 0 : i32
    return %c0_i32, %c0_i32_0 : i32, i32
  }
  func.func @transform_5(%arg0: i32) -> (i32, i32) {
    %c0_i32 = arith.constant 0 : i32
    %c0_i32_0 = arith.constant 0 : i32
    %c0_i32_1 = arith.constant 0 : i32
    return %c0_i32, %c0_i32_0 : i32, i32
  }
  func.func @transform_6(%arg0: i32) -> (i32, i32) {
    %c0_i32 = arith.constant 0 : i32
    %c0_i32_0 = arith.constant 0 : i32
    return %arg0, %c0_i32 : i32, i32
  }
}

</mosaic_0001>

<bundles_post_ra>
// kernel: classification_head.1
= control target key start
LH: loop header
LB: loop body
LE: loop exit
PB: predicated region body
PF: predicated region fallthrough
CT: control target
= control target key end

     0   :  { %v34_v20 = vlaneseq  ;;  %vm1306_vm8 = vmmov 0   ;;  %s1660_s3 = inlined_call_operand.vmem [shape: bf16[1024,128], index: 3, kind: input, shape index: {}]   ;;  %s1661_s0 = inlined_call_operand.vmem [shape: f32[8,1024], index: 0, kind: input, shape index: {}]   ;;  %s1662_s1 = inlined_call_operand.vmem [shape: f32[1,1024], index: 1, kind: input, shape index: {}]   ;;  %s1663_s2 = inlined_call_operand.vmem [shape: f32[1,1024], index: 2, kind: input, shape index: {}]   ;;  %s1664_s4 = inlined_call_operand.vmem [shape: bf16[128,128], index: 4, kind: input, shape index: {}]   ;;  %s1665_s5 = inlined_call_operand.vmem [shape: f32[1,128], index: 5, kind: input, shape index: {}]   ;;  %s1666_s6 = inlined_call_operand.vmem [shape: f32[8,128], index: 6, kind: output, shape index: {}]  }
   0x1   :  { %v1201_v0 = vld [vmem:[%s1660_s3 + $0x78] sm:$0xff]   ;;  %v1205_v4 = vld [vmem:[%s1660_s3 + $0x70] sm:$0xff]   ;;  %v1209_v8 = vld [vmem:[%s1660_s3 + $0x68] sm:$0xff]  }
   0x2   :  { %v1202_v1 = vld [vmem:[%s1660_s3 + $0xf8] sm:$0xff]   ;;  %1082 = vmatprep.subr.bf16.mxu0 %v1201_v0  ;;  %v1206_v5 = vld [vmem:[%s1660_s3 + $0xf0] sm:$0xff]   ;;  %v1210_v9 = vld [vmem:[%s1660_s3 + $0xe8] sm:$0xff]   ;;  %v1414_v25 = vshrl.u32 %v34_v20, 7 }
   0x3   :  { %v1203_v2 = vld [vmem:[%s1660_s3 + $0x38] sm:$0xff]   ;;  %1104 = vmatprep.subr.bf16.mxu1 %v1202_v1  ;;  %v1207_v6 = vld [vmem:[%s1660_s3 + $0x30] sm:$0xff]   ;;  %v1211_v10 = vld [vmem:[%s1660_s3 + $0x28] sm:$0xff]  }
   0x4   :  { %v1204_v3 = vld [vmem:[%s1660_s3 + $0xb8] sm:$0xff]   ;;  %1083 = vmatpush3.bf16.msra.mxu0 %v1203_v2  ;;  %v1208_v7 = vld [vmem:[%s1660_s3 + $0xb0] sm:$0xff]   ;;  %v1212_v11 = vld [vmem:[%s1660_s3 + $0xa8] sm:$0xff]   ;;  %v40_v30 = vsub.s32 1, %v1414_v25  ;;  %v48_v32 = vsub.s32 3, %v1414_v25  ;;  %v36_v34 = vsub.s32 0, %v1414_v25 }
   0x5   :  { %1105 = vmatpush3.bf16.msra.mxu1 %v1204_v3  ;;  %1084 = vmatprep.subr.bf16.mxu0 %v1205_v4  ;;  %v1213_v12 = vld [vmem:[%s1660_s3 + $0x60] sm:$0xff]   ;;  %v1217_v16 = vld [vmem:[%s1660_s3 + $0x58] sm:$0xff]   ;;  %v1221_v21 = vld [vmem:[%s1660_s3 + $0x50] sm:$0xff]   ;;  %v44_v36 = vsub.s32 2, %v1414_v25  ;;  %v52_v20 = vsub.s32 4, %v1414_v25 }
   0x6   :  { %1106 = vmatprep.subr.bf16.mxu1 %v1206_v5  ;;  %v1214_v13 = vld [vmem:[%s1660_s3 + $0xe0] sm:$0xff]   ;;  %v1218_v17 = vld [vmem:[%s1660_s3 + $0xd8] sm:$0xff]   ;;  %v1222_v22 = vld [vmem:[%s1660_s3 + $0xd0] sm:$0xff]  }
   0x7   :  { %v1215_v14 = vld [vmem:[%s1660_s3 + $0x20] sm:$0xff]   ;;  %v1219_v18 = vld [vmem:[%s1660_s3 + $0x18] sm:$0xff]   ;;  %v1223_v23 = vld [vmem:[%s1660_s3 + $0x10] sm:$0xff]  }
   0x8   :  { %1085 = vmatpush3.bf16.msra.mxu0 %v1207_v6  ;;  %v1216_v15 = vld [vmem:[%s1660_s3 + $0xa0] sm:$0xff]   ;;  %v1220_v19 = vld [vmem:[%s1660_s3 + $0x98] sm:$0xff]   ;;  %v1224_v24 = vld [vmem:[%s1660_s3 + $0x90] sm:$0xff]  }
   0x9   :  { %1107 = vmatpush3.bf16.msra.mxu1 %v1208_v7  ;;  %1086 = vmatprep.subr.bf16.mxu0 %v1209_v8  ;;  %v1225_v26 = vld [vmem:[%s1660_s3 + $0x48] sm:$0xff]   ;;  %v1229_v31 = vld [vmem:[%s1660_s3 + $0x40] sm:$0xff]   ;;  %v27_v43 = vld [vmem:[%s1661_s0 + $0x18] sm:$0xff] }
   0xa   :  { %1108 = vmatprep.subr.bf16.mxu1 %v1210_v9  ;;  %v1226_v27 = vld [vmem:[%s1660_s3 + $0xc8] sm:$0xff]   ;;  %v1230_v33 = vld [vmem:[%s1660_s3 + $0xc0] sm:$0xff]   ;;  %v1233_v46 = vld [vmem:[%s1660_s3 + $0x178] sm:$0xff]  }
   0xb   :  { %v1227_v28 = vld [vmem:[%s1660_s3 + $0x8] sm:$0xff]   ;;  %v1231_v35 = vld [vmem:[%s1660_s3] sm:$0xff]   ;;  %v1234_v53 = vld [vmem:[%s1660_s3 + $0x1f8] sm:$0xff]  }
   0xc   :  { %1087 = vmatpush3.bf16.msra.mxu0 %v1211_v10  ;;  %v1228_v29 = vld [vmem:[%s1660_s3 + $0x88] sm:$0xff]   ;;  %v1232_v37 = vld [vmem:[%s1660_s3 + $0x80] sm:$0xff]   ;;  %v26_v55 = vld [vmem:[%s1661_s0 + $0x10] sm:$0xff] }
   0xd   :  { %1109 = vmatpush3.bf16.msra.mxu1 %v1212_v11  ;;  %1088 = vmatprep.subr.bf16.mxu0 %v1213_v12  ;;  %v25_v38 = vld [vmem:[%s1661_s0 + $0x8] sm:$0xff]  ;;  %v32_v39 = vld [vmem:[%s1662_s1] sm:$0xff] }
   0xe   :  { %1110 = vmatprep.subr.bf16.mxu1 %v1214_v13  ;;  %v1453_v40 = vld [vmem:[%s1663_s2] sm:$0xff]  ;;  %v41_v41 = vrot.slane %v32_v39, %v40_v30  ;;  %v49_v44 = vrot.slane %v32_v39, %v48_v32  ;;  %v37_v47 = vrot.slane %v32_v39, %v36_v34  ;;  %v45_v49 = vrot.slane %v32_v39, %v44_v36 }
   0xf   :  { %v91_v42 = vrot.slane %v1453_v40, %v40_v30  ;;  %v99_v45 = vrot.slane %v1453_v40, %v48_v32  ;;  %v87_v48 = vrot.slane %v1453_v40, %v36_v34  ;;  %v95_v50 = vrot.slane %v1453_v40, %v44_v36  ;;  %v24_v54 = vld [vmem:[%s1661_s0] sm:$0xff]  ;;  %v30_v34 = vld [vmem:[%s1661_s0 + $0x30] sm:$0xff] }
  0x10   :  { %1089 = vmatpush3.bf16.msra.mxu0 %v1215_v14  ;;  %v75_v51 = vmul.f32 %v41_v41, %v25_v38  ;;  %v77_v52 = vmul.f32 %v49_v44, %v27_v43  ;;  %v74_v56 = vmul.f32 %v37_v47, %v24_v54  ;;  %v76_v57 = vmul.f32 %v45_v49, %v26_v55 }
  0x11   :  { %1111 = vmatpush3.bf16.msra.mxu1 %v1216_v15  ;;  %1090 = vmatprep.subr.bf16.mxu0 %v1217_v16  ;;  %v103_v30 = vrot.slane %v1453_v40, %v52_v20 }
  0x12   :  { %1112 = vmatprep.subr.bf16.mxu1 %v1218_v17  ;;  %v1474_v58 = vadd.f32 %v91_v42, %v75_v51  ;;  %v1476_v59 = vadd.f32 %v99_v45, %v77_v52  ;;  %v1478_v60 = vadd.f32 %v87_v48, %v74_v56  ;;  %v1480_v61 = vadd.f32 %v95_v50, %v76_v57 }
  0x13   :  { %v56_v17 = vsub.s32 5, %v1414_v25 }
  0x14   :  { %1091 = vmatpush3.bf16.msra.mxu0 %v1219_v18  ;;  %v133_v62 = vand.u32 2147483647, %v1474_v58  ;;  %v135_v63 = vand.u32 2147483647, %v1476_v59  ;;  %v132_v0 = vand.u32 2147483647, %v1478_v60 }
  0x15   :  { %1113 = vmatpush3.bf16.msra.mxu1 %v1220_v19  ;;  %1092 = vmatprep.subr.bf16.mxu0 %v1221_v21  ;;  %v134_v1 = vand.u32 2147483647, %v1480_v61  ;;  %v64_v19 = vsub.s32 7, %v1414_v25  ;;  %v60_v21 = vsub.s32 6, %v1414_v25  ;;  %v31_v25 = vld [vmem:[%s1661_s0 + $0x38] sm:$0xff]  ;;  %vm181_vm0 = vcmp.ge.f32.partialorder %v1474_v58, 0.0 }
  0x16   :  { %1114 = vmatprep.subr.bf16.mxu1 %v1222_v22  ;;  %v141_v2 = vsub.f32 0.0, %v133_v62  ;;  %v143_v3 = vsub.f32 0.0, %v135_v63  ;;  %v140_v4 = vsub.f32 0.0, %v132_v0  ;;  %v57_v22 = vrot.slane %v32_v39, %v56_v17 }
  0x17   :  { %v142_v5 = vsub.f32 0.0, %v134_v1  ;;  %vm183_vm1 = vcmp.ge.f32.partialorder %v1476_v59, 0.0  ;;  %vm180_vm2 = vcmp.ge.f32.partialorder %v1478_v60, 0.0  ;;  %vm182_vm3 = vcmp.ge.f32.partialorder %v1480_v61, 0.0 }
  0x18   :  { %1093 = vmatpush3.bf16.msra.mxu0 %v1223_v23  ;;  %v150_v6 = vmul.f32 1.442695, %v141_v2  ;;  %v154_v7 = vmul.f32 1.442695, %v143_v3  ;;  %v148_v8 = vmul.f32 1.442695, %v140_v4  ;;  %v65_v23 = vrot.slane %v32_v39, %v64_v19 }
  0x19   :  { %1115 = vmatpush3.bf16.msra.mxu1 %v1224_v24  ;;  %1094 = vmatprep.subr.bf16.mxu0 %v1225_v26  ;;  %v152_v9 = vmul.f32 1.442695, %v142_v5  ;;  %v53_v24 = vrot.slane %v32_v39, %v52_v20  ;;  %v61_v26 = vrot.slane %v32_v39, %v60_v21  ;;  %v1245_v20 = vld [vmem:[%s1660_s3 + $0x160] sm:$0xff]  }
  0x1a   :  { %1116 = vmatprep.subr.bf16.mxu1 %v1226_v27  ;;  %1273 = vpow2.f32 %v150_v6  ;;  %v107_v27 = vrot.slane %v1453_v40, %v56_v17  ;;  %v1242_v17 = vld [vmem:[%s1660_s3 + $0x1e8] sm:$0xff]  }
  0x1b   :  { %1275 = vpow2.f32 %v154_v7 }
  0x1c   :  { %1095 = vmatpush3.bf16.msra.mxu0 %v1227_v28  ;;  %1277 = vpow2.f32 %v148_v8  ;;  %v29_v28 = vld [vmem:[%s1661_s0 + $0x28] sm:$0xff] }
  0x1d   :  { %1117 = vmatpush3.bf16.msra.mxu1 %v1228_v29  ;;  %1096 = vmatprep.subr.bf16.mxu0 %v1229_v31  ;;  %1279 = vpow2.f32 %v152_v9  ;;  %v115_v29 = vrot.slane %v1453_v40, %v64_v19  ;;  %v111_v31 = vrot.slane %v1453_v40, %v60_v21  ;;  %v79_v32 = vmul.f32 %v57_v22, %v29_v28  ;;  %v1235_v9 = vld [vmem:[%s1660_s3 + $0x138] sm:$0xff]   ;;  %v1244_v19 = vld [vmem:[%s1660_s3 + $0x1a8] sm:$0xff]   ;;  %v1246_v21 = vld [vmem:[%s1660_s3 + $0x1e0] sm:$0xff]  }
  0x1e   :  { %1118 = vmatprep.subr.bf16.mxu1 %v1230_v33  ;;  %v28_v33 = vld [vmem:[%s1661_s0 + $0x20] sm:$0xff] }
  0x1f   :  { %v78_v36 = vmul.f32 %v53_v24, %v28_v33  ;;  %v1506_v38 = vadd.f32 %v107_v27, %v79_v32  ;;  %v1249_v27 = vld [vmem:[%s1660_s3 + $0x158] sm:$0xff]  }
  0x20   :  { %1097 = vmatpush3.bf16.msra.mxu0 %v1231_v35  ;;  %v81_v35 = vmul.f32 %v65_v23, %v31_v25  ;;  %v1247_v23 = vld [vmem:[%s1660_s3 + $0x120] sm:$0xff]   ;;  %v1251_v25 = vld [vmem:[%s1660_s3 + $0x118] sm:$0xff]  }
  0x21   :  { %1119 = vmatpush3.bf16.msra.mxu1 %v1232_v37  ;;  %1126 = vmatprep.subr.bf16.mxu0 %v1233_v46  ;;  %v80_v37 = vmul.f32 %v61_v26, %v30_v34  ;;  %v1510_v40 = vadd.f32 %v103_v30, %v78_v36  ;;  %v137_v43 = vand.u32 2147483647, %v1506_v38  ;;  %v1248_v26 = vld [vmem:[%s1660_s3 + $0x1a0] sm:$0xff]   ;;  %v1250_v30 = vld [vmem:[%s1660_s3 + $0x1d8] sm:$0xff]   ;;  %v1254_v36 = vld [vmem:[%s1660_s3 + $0x1d0] sm:$0xff]   ;;  %vm185_vm4 = vcmp.ge.f32.partialorder %v1506_v38, 0.0 }
  0x22   :  { %1148 = vmatprep.subr.bf16.mxu1 %v1234_v53  ;;  %v1508_v39 = vadd.f32 %v115_v29, %v81_v35  ;;  %v1252_v34 = vld [vmem:[%s1660_s3 + $0x198] sm:$0xff]   ;;  %v1253_v35 = vld [vmem:[%s1660_s3 + $0x150] sm:$0xff]  }
  0x23   :  { %v1512_v41 = vadd.f32 %v111_v31, %v80_v37  ;;  %v136_v47 = vand.u32 2147483647, %v1510_v40  ;;  %v145_v50 = vsub.f32 0.0, %v137_v43  ;;  %v1256_v43 = vld [vmem:[%s1660_s3 + $0x190] sm:$0xff]   ;;  %vm184_vm6 = vcmp.ge.f32.partialorder %v1510_v40, 0.0 }
  0x24   :  { %v139_v46 = vand.u32 2147483647, %v1508_v39  ;;  %vm187_vm5 = vcmp.ge.f32.partialorder %v1508_v39, 0.0 }
  0x25   :  { %v138_v51 = vand.u32 2147483647, %v1512_v41  ;;  %v144_v56 = vsub.f32 0.0, %v136_v47  ;;  %v158_v0 = vmul.f32 1.442695, %v145_v50  ;;  %v1260_v47 = vld [vmem:[%s1660_s3 + $0x188] sm:$0xff]  }
  0x26   :  { %v147_v55 = vsub.f32 0.0, %v139_v46  ;;  %v1259_v46 = vld [vmem:[%s1660_s3 + $0x108] sm:$0xff]   ;;  %vm186_vm7 = vcmp.ge.f32.partialorder %v1512_v41, 0.0 }
  0x27   :  { %v1274_v10 = vpop.eup %1273  ;;  %v156_v4 = vmul.f32 1.442695, %v144_v56 }
  0x28   :  { %v1276_v11 = vpop.eup %1275  ;;  %v165_v12 = vadd.f32 1.0, %v1274_v10  ;;  %v162_v3 = vmul.f32 1.442695, %v147_v55 }
  0x29   :  { %v1278_v13 = vpop.eup %1277  ;;  %v167_v14 = vadd.f32 1.0, %v1276_v11 }
  0x2a   :  { %v1280_v15 = vpop.eup %1279  ;;  %1281 = vrcp.f32 %v165_v12  ;;  %v164_v16 = vadd.f32 1.0, %v1278_v13 }
  0x2b   :  { %1283 = vrcp.f32 %v167_v14  ;;  %v166_v18 = vadd.f32 1.0, %v1280_v15  ;;  %v1239_v14 = vld [vmem:[%s1660_s3 + $0x130] sm:$0xff]  }
  0x2c   :  { %1285 = vrcp.f32 %v164_v16  ;;  %v1241_v16 = vld [vmem:[%s1660_s3 + $0x168] sm:$0xff]  }
  0x2d   :  { %1287 = vrcp.f32 %v166_v18  ;;  %v1243_v18 = vld [vmem:[%s1660_s3 + $0x128] sm:$0xff]  }
  0x2e   :  { %1289 = vpow2.f32 %v158_v0 }
  0x2f   :  { %1291 = vpow2.f32 %v162_v3 }
  0x30   :  { %1293 = vpow2.f32 %v156_v4 }
  0x37   :  { %v1282_v42 = vpop.eup %1281 }
  0x38   :  { %v1284_v44 = vpop.eup %1283  ;;  %v189_v45 = vmul.f32 %v1282_v42, %v1274_v10 }
  0x39   :  { %v1286_v48 = vpop.eup %1285  ;;  %v191_v49 = vmul.f32 %v1284_v44, %v1276_v11  ;;  %v1236_v11 = vld [vmem:[%s1660_s3 + $0x1b8] sm:$0xff]  }
  0x3a   :  { %v1288_v52 = vpop.eup %1287  ;;  %v197_v53 = vsel %vm181_vm0, %v1282_v42, %v189_v45  ;;  %v188_v54 = vmul.f32 %v1286_v48, %v1278_v13  ;;  %v1255_v42 = vld [vmem:[%s1660_s3 + $0x110] sm:$0xff]   ;;  %v1258_v45 = vld [vmem:[%s1660_s3 + $0x1c8] sm:$0xff]  }
  0x3b   :  { %v205_v57 = vmul.f32 %v197_v53, %v1474_v58  ;;  %v199_v62 = vsel %vm183_vm1, %v1284_v44, %v191_v49  ;;  %v190_v63 = vmul.f32 %v1288_v52, %v1280_v15  ;;  %v1240_v15 = vld [vmem:[%s1660_s3 + $0x1b0] sm:$0xff]   ;;  %v1290_v22 = vpop.eup %1289  ;;  %v1257_v44 = vld [vmem:[%s1660_s3 + $0x148] sm:$0xff]   ;;  %v1262_v49 = vld [vmem:[%s1660_s3 + $0x1c0] sm:$0xff]  }
  0x3c   :  { %v207_v1 = vmul.f32 %v199_v62, %v1476_v59  ;;  %v196_v2 = vsel %vm180_vm2, %v1286_v48, %v188_v54  ;;  %v146_v59 = vsub.f32 0.0, %v138_v51  ;;  %v1292_v24 = vpop.eup %1291  ;;  %v169_v28 = vadd.f32 1.0, %v1290_v22  ;;  %v1261_v48 = vld [vmem:[%s1660_s3 + $0x140] sm:$0xff]  }
  0x3d   :  { %v213_v5 = vpack.c.bf16 %v205_v57, %v205_v57  ;;  %v204_v6 = vmul.f32 %v196_v2, %v1478_v60  ;;  %v198_v7 = vsel %vm182_vm3, %v1288_v52, %v190_v63  ;;  %v1237_v60 = vld [vmem:[%s1660_s3 + $0x170] sm:$0xff]   ;;  %v1294_v29 = vpop.eup %1293  ;;  %v171_v31 = vadd.f32 1.0, %v1292_v24  ;;  %v1263_v51 = vld [vmem:[%s1660_s3 + $0x100] sm:$0xff]  }
  0x3e   :  { %v215_v58 = vpack.c.bf16 %v207_v1, %v207_v1  ;;  %v206_v8 = vmul.f32 %v198_v7, %v1480_v61  ;;  %v1238_v61 = vld [vmem:[%s1660_s3 + $0x1f0] sm:$0xff]   ;;  %v160_v13 = vmul.f32 1.442695, %v146_v59  ;;  %v168_v32 = vadd.f32 1.0, %v1294_v29  ;;  %v1264_v53 = vld [vmem:[%s1660_s3 + $0x180] sm:$0xff]  }
  0x3f   :  { %764 = vmatprep.mubr.bf16.mxu0 %v213_v5  ;;  %v212_v10 = vpack.c.bf16 %v204_v6, %v204_v6  ;;  %v1305_v59 = vmov 0.0  }
  0x40   :  { %804 = vmatprep.mubr.bf16.mxu1 %v215_v58  ;;  %v214_v12 = vpack.c.bf16 %v206_v8, %v206_v8  ;;  %1295 = vpow2.f32 %v160_v13 }
  0x41   :  { %765 = vmatmul.mubr.bf16.vlgmr.msra.gmra.mxu0 %v212_v10  ;;  %1297 = vrcp.f32 %v169_v28  ;;  %v1267_v10 = vld [vmem:[%s1664_s4 + $0x28] sm:$0xff]  }
  0x42   :  { %805 = vmatmul.mubr.bf16.vlgmr.msra.gmra.mxu1 %v214_v12  ;;  %1127 = vmatpush3.bf16.msra.mxu0 %v1235_v9  ;;  %1299 = vrcp.f32 %v171_v31  ;;  %v1271_v12 = vld [vmem:[%s1664_s4 + $0x8] sm:$0xff]  }
  0x43   :  { %1149 = vmatpush3.bf16.msra.mxu1 %v1236_v11  ;;  %1128 = vmatprep.subr.bf16.mxu0 %v1237_v60  ;;  %1301 = vrcp.f32 %v168_v32  ;;  %v1269_v11 = vld [vmem:[%s1664_s4 + $0x18] sm:$0xff]   ;;  %v1270_v60 = vld [vmem:[%s1664_s4 + $0x10] sm:$0xff]  }
  0x44   :  { %1150 = vmatprep.subr.bf16.mxu1 %v1238_v61  ;;  %v1272_v61 = vld [vmem:[%s1664_s4] sm:$0xff]  }
  0x46   :  { %1129 = vmatpush3.bf16.msra.mxu0 %v1239_v14 }
  0x47   :  { %1151 = vmatpush3.bf16.msra.mxu1 %v1240_v15  ;;  %1130 = vmatprep.subr.bf16.mxu0 %v1241_v16 }
  0x48   :  { %1152 = vmatprep.subr.bf16.mxu1 %v1242_v17 }
  0x4a   :  { %1131 = vmatpush3.bf16.msra.mxu0 %v1243_v18 }
  0x4b   :  { %1153 = vmatpush3.bf16.msra.mxu1 %v1244_v19  ;;  %1132 = vmatprep.subr.bf16.mxu0 %v1245_v20 }
  0x4c   :  { %1154 = vmatprep.subr.bf16.mxu1 %v1246_v21 }
  0x4d   :  { %v1296_v33 = vpop.eup %1295 }
  0x4e   :  { %1133 = vmatpush3.bf16.msra.mxu0 %v1247_v23  ;;  %v170_v37 = vadd.f32 1.0, %v1296_v33  ;;  %v1298_v50 = vpop.eup %1297 }
  0x4f   :  { %1155 = vmatpush3.bf16.msra.mxu1 %v1248_v26  ;;  %1134 = vmatprep.subr.bf16.mxu0 %v1249_v27  ;;  %v1300_v52 = vpop.eup %1299  ;;  %v193_v54 = vmul.f32 %v1298_v50, %v1290_v22 }
  0x50   :  { %1156 = vmatprep.subr.bf16.mxu1 %v1250_v30  ;;  %1303 = vrcp.f32 %v170_v37  ;;  %v1302_v55 = vpop.eup %1301  ;;  %v195_v56 = vmul.f32 %v1300_v52, %v1292_v24  ;;  %v1073_v37 = vld [vmem:[%s1665_s5] ss:$0 sm:$0xff] }
  0x51   :  { %v201_v57 = vsel %vm185_vm4, %v1298_v50, %v193_v54  ;;  %v192_v62 = vmul.f32 %v1302_v55, %v1294_v29 }
  0x52   :  { %1135 = vmatpush3.bf16.msra.mxu0 %v1251_v25  ;;  %v209_v63 = vmul.f32 %v201_v57, %v1506_v38  ;;  %v203_v0 = vsel %vm187_vm5, %v1300_v52, %v195_v56 }
  0x53   :  { %1157 = vmatpush3.bf16.msra.mxu1 %v1252_v34  ;;  %1136 = vmatprep.subr.bf16.mxu0 %v1253_v35  ;;  %v211_v2 = vmul.f32 %v203_v0, %v1508_v39  ;;  %v200_v3 = vsel %vm184_vm6, %v1302_v55, %v192_v62  ;;  %v1265_v39 = vld [vmem:[%s1664_s4 + $0x38] sm:$0xff]  }
  0x54   :  { %1158 = vmatprep.subr.bf16.mxu1 %v1254_v36  ;;  %v217_v4 = vpack.c.bf16 %v209_v63, %v209_v63  ;;  %v208_v5 = vmul.f32 %v200_v3, %v1510_v40  ;;  %v1266_v40 = vld [vmem:[%s1664_s4 + $0x30] sm:$0xff]  }
  0x55   :  { %v219_v7 = vpack.c.bf16 %v211_v2, %v211_v2 }
  0x56   :  { %1137 = vmatpush3.bf16.msra.mxu0 %v1255_v42  ;;  %844 = vmatprep.mubr.bf16.mxu0 %v217_v4  ;;  %v216_v58 = vpack.c.bf16 %v208_v5, %v208_v5 }
  0x57   :  { %1159 = vmatpush3.bf16.msra.mxu1 %v1256_v43  ;;  %1138 = vmatprep.subr.bf16.mxu0 %v1257_v44 }
  0x58   :  { %1160 = vmatprep.subr.bf16.mxu1 %v1258_v45  ;;  %884 = vmatprep.mubr.bf16.mxu1 %v219_v7 }
  0x5a   :  { %1139 = vmatpush3.bf16.msra.mxu0 %v1259_v46 }
  0x5b   :  { %1161 = vmatpush3.bf16.msra.mxu1 %v1260_v47  ;;  %1140 = vmatprep.subr.bf16.mxu0 %v1261_v48 }
  0x5c   :  { %1162 = vmatprep.subr.bf16.mxu1 %v1262_v49 }
  0x5d   :  { %v1304_v1 = vpop.eup %1303 }
  0x5e   :  { %1141 = vmatpush3.bf16.msra.mxu0 %v1263_v51  ;;  %v194_v6 = vmul.f32 %v1304_v1, %v1296_v33 }
  0x5f   :  { %1163 = vmatpush3.bf16.msra.mxu1 %v1264_v53  ;;  %1179 = vmatprep.subr.bf16.mxu0 %v1305_v59 }
  0x60   :  { %v202_v8 = vsel %vm186_vm7, %v1304_v1, %v194_v6 }
  0x61   :  { %v210_v9 = vmul.f32 %v202_v8, %v1512_v41  ;;  %845 = vmatmul.mubr.bf16.vlgmr.msra.gmra.mxu0 %v216_v58  ;;  %v1268_v41 = vld [vmem:[%s1664_s4 + $0x20] sm:$0xff]  }
  0x62   :  { %1180 = vmatpush3.bf16.msra.mxu0 %v1265_v39  ;;  %1195 = vmatprep.mubr.msk.bf16.mxu0 %vm1306_vm8, %v1305_v59 }
  0x63   :  { %v218_v38 = vpack.c.bf16 %v210_v9, %v210_v9  ;;  %1181 = vmatprep.subr.bf16.mxu0 %v1305_v59 }
  0x65   :  { %885 = vmatmul.mubr.bf16.vlgmr.msra.gmra.mxu1 %v218_v38 }
  0x66   :  { %1182 = vmatpush3.bf16.msra.mxu0 %v1266_v40 }
  0x67   :  { %1183 = vmatprep.subr.bf16.mxu0 %v1305_v59 }
  0x6a   :  { %1184 = vmatpush3.bf16.msra.mxu0 %v1267_v10 }
  0x6b   :  { %1185 = vmatprep.subr.bf16.mxu0 %v1305_v59 }
  0x6e   :  { %1186 = vmatpush3.bf16.msra.mxu0 %v1268_v41 }
  0x6f   :  { %1187 = vmatprep.subr.bf16.mxu0 %v1305_v59 }
  0x72   :  { %1188 = vmatpush3.bf16.msra.mxu0 %v1269_v11 }
  0x73   :  { %1189 = vmatprep.subr.bf16.mxu0 %v1305_v59 }
  0x76   :  { %1190 = vmatpush3.bf16.msra.mxu0 %v1270_v60 }
  0x77   :  { %1191 = vmatprep.subr.bf16.mxu0 %v1305_v59 }
  0x7a   :  { %1192 = vmatpush3.bf16.msra.mxu0 %v1271_v12 }
  0x7b   :  { %1193 = vmatprep.subr.bf16.mxu0 %v1305_v59 }
  0x7e   :  { %1194 = vmatpush3.bf16.msra.mxu0 %v1272_v61 }
 0x101   :  { %v1098_v13 = vpop.f32.mrf.mxu0 }
 0x102   :  { %v1120_v14 = vpop.f32.mrf.mxu1 }
 0x103   :  { %v1099_v15 = vpop.f32.mrf.mxu0 }
 0x104   :  { %v1121_v16 = vpop.f32.mrf.mxu1  ;;  %v1100_v21 = vadd.f32 %v1099_v15, %v1098_v13 }
 0x105   :  { %v1101_v17 = vpop.f32.mrf.mxu0  ;;  %v1122_v22 = vadd.f32 %v1121_v16, %v1120_v14 }
 0x106   :  { %v1123_v18 = vpop.f32.mrf.mxu1 }
 0x107   :  { %v1102_v19 = vpop.f32.mrf.mxu0  ;;  %v807_v26 = vadd.f32 %v1122_v22, %v1100_v21 }
 0x108   :  { %v1124_v20 = vpop.f32.mrf.mxu1 }
 0x121   :  { %v1142_v23 = vpop.f32.mrf.mxu0 }
 0x123   :  { %v1143_v24 = vpop.f32.mrf.mxu0 }
 0x124   :  { %v1144_v28 = vadd.f32 %v1143_v24, %v1142_v23 }
 0x125   :  { %v1164_v27 = vpop.f32.mrf.mxu1  ;;  %v1145_v29 = vpop.f32.mrf.mxu0 }
 0x126   :  { %v847_v30 = vadd.f32 %v1144_v28, %v807_v26 }
 0x127   :  { %v1165_v31 = vpop.f32.mrf.mxu1  ;;  %v1146_v25 = vpop.f32.mrf.mxu0 }
 0x128   :  { %v1166_v32 = vadd.f32 %v1165_v31, %v1164_v27 }
 0x129   :  { %v1167_v33 = vpop.f32.mrf.mxu1 }
 0x12a   :  { %v887_v34 = vadd.f32 %v1166_v32, %v847_v30 }
 0x12b   :  { %v1168_v35 = vpop.f32.mrf.mxu1 }
 0x12c   :  { %v892_v36 = vpack.c.bf16 %v887_v34, %v887_v34 }
 0x12e   :  { %1196 = vmatmul.mubr.bf16.vlgmr.msra.gmra.mxu0 %v892_v36 }
 0x1ee   :  { %v998_v42 = vpop.f32.mrf.mxu0 }
 0x1ef   :  { %v999_v43 = vadd.f32 %v1073_v37, %v998_v42 }
 0x1f0   :  { %v1197_v44 = vpop.f32.mrf.mxu0 }
 0x1f1   :  { %1004 = vst [vmem:[%s1666_s6] sm:$0xff] %v999_v43 }
 0x1f2   :  { %v1001_v45 = vpop.f32.mrf.mxu0 }
 0x1f4   :  { %v1198_v46 = vpop.f32.mrf.mxu0 }

</bundles_post_ra>
